<compile_context>
chip_gen: v7x
topology: tpu7x:2x2x1
jax: 0.10.0
libtpu: 0.0.40
codegen_flags: <defaults>
</compile_context>

<pallas_src>
import jax
import jax.numpy as jnp
from jax.experimental import pallas as pl
from jax.experimental.pallas import tpu as pltpu


def _ce_kernel(x_ref, w_ref, b_ref, y_ref, loss_ref):
    x = x_ref[...]        # (B, Hin)   f32, VMEM
    w = w_ref[...]        # (Hout, Hin) f32, VMEM (torch nn.Linear layout)
    bias = b_ref[...]     # (1, Hout)  f32, VMEM

    # logits = x @ W^T + b on the MXU, without materializing W^T anywhere.
    logits = jax.lax.dot_general(
        x, w,
        dimension_numbers=(((1,), (1,)), ((), ())),
        preferred_element_type=jnp.float32,
    ) + bias                                                   # (B, Hout) f32

    B, H = logits.shape

    # Numerically stable log-sum-exp per row, reduced to a scalar sum.
    m = jnp.max(logits, axis=-1, keepdims=True)                # (B, 1)
    lse = m + jnp.log(jnp.sum(jnp.exp(logits - m), axis=-1, keepdims=True))
    sum_lse = jnp.sum(lse)                                     # scalar

    # Target-logit gather: y is in SMEM; each row's class id is read as a
    # scalar, broadcast against a lane iota, and the masked row is accumulated
    # into a single (1, H) vreg row.  B is small & static here; at scale this
    # becomes a lane-aligned VMEM one-hot / batch-grid formulation.
    cls_row = jax.lax.broadcasted_iota(jnp.int32, (1, H), 1)   # (1, H)
    acc = jnp.zeros((1, H), jnp.float32)
    for i in range(B):                       # static unroll, B scalar SMEM reads
        yi = y_ref[i]                        # i32 scalar from SMEM
        acc = acc + jnp.where(cls_row == yi, logits[i:i + 1, :], 0.0)
    sum_tgt = jnp.sum(acc)                   # scalar: sum_i logits[i, y[i]]
    # Note: out-of-range targets (y < 0 or y >= H) contribute 0 to sum_tgt
    # (loss degrades to lse) rather than raising, matching the previous kernel.

    # Mean cross-entropy, written directly to the SMEM scalar output.
    loss_ref[0, 0] = (sum_lse - sum_tgt) / jnp.float32(B)


def simple_model_loss(x, w, b, y):
    """x: (B, H) f32, w: (H, H) f32 (torch Linear layout), b: (H,) f32, y: (B,) int."""
    B, H = x.shape
    b2d = b.reshape(1, H)
    y1d = y.astype(jnp.int32)

    loss = pl.pallas_call(
        _ce_kernel,
        out_shape=jax.ShapeDtypeStruct((1, 1), jnp.float32),
        in_specs=[
            pl.BlockSpec(memory_space=pltpu.MemorySpace.VMEM),   # x
            pl.BlockSpec(memory_space=pltpu.MemorySpace.VMEM),   # w (torch layout)
            pl.BlockSpec(memory_space=pltpu.MemorySpace.VMEM),   # bias
            pl.BlockSpec(memory_space=pltpu.MemorySpace.SMEM),   # y (targets)
        ],
        out_specs=pl.BlockSpec(memory_space=pltpu.MemorySpace.SMEM),  # scalar loss
    )(x, w, b2d, y1d)
    return loss[0, 0]


if __name__ == "__main__":
    hidden_dim = 32
    batch = 8

    key = jax.random.PRNGKey(0)
    kx, kw, kb, ky = jax.random.split(key, 4)

    # Deterministic parameter init (torch.nn.Linear-style uniform bounds).
    bound = 1.0 / jnp.sqrt(hidden_dim)
    w = jax.random.uniform(kw, (hidden_dim, hidden_dim), jnp.float32, -bound, bound)
    b = jax.random.uniform(kb, (hidden_dim,), jnp.float32, -bound, bound)

    x = jax.random.normal(kx, (batch, hidden_dim), jnp.float32)
    y = jax.random.randint(ky, (batch,), 0, hidden_dim, jnp.int32)

    loss = simple_model_loss(x, w, b, y)
    jax.block_until_ready(loss)

    # Reference check in plain JAX (same math, no Pallas).
    logits_ref = x @ w.T + b
    lse_ref = jax.nn.logsumexp(logits_ref, axis=-1)
    ref = jnp.mean(lse_ref - logits_ref[jnp.arange(batch), y])
    assert jnp.allclose(loss, ref, atol=1e-5, rtol=1e-5), (loss, ref)

    print("KERNEL_OK")
</pallas_src>

<mosaic_0001>
module attributes {stable_mosaic.version = 11 : i64} {
  func.func @_ce_kernel(%arg0: memref<8x32xf32, #tpu.memory_space<vmem>>, %arg1: memref<32x32xf32, #tpu.memory_space<vmem>>, %arg2: memref<1x32xf32, #tpu.memory_space<vmem>>, %arg3: memref<8xi32, #tpu.memory_space<smem>>, %arg4: memref<1x1xf32, #tpu.memory_space<smem>>) attributes {dimension_semantics = [], scalar_prefetch = 0 : i64, scratch_operands = 0 : i64, tpu.core_type = #tpu.core_type<tc>} {
    %c0 = arith.constant 0 : index
    %c0_0 = arith.constant 0 : index
    %0 = vector.load %arg0[%c0, %c0_0] : memref<8x32xf32, #tpu.memory_space<vmem>>, vector<8x32xf32>
    %c0_1 = arith.constant 0 : index
    %c0_2 = arith.constant 0 : index
    %1 = vector.load %arg1[%c0_1, %c0_2] : memref<32x32xf32, #tpu.memory_space<vmem>>, vector<32x32xf32>
    %c0_3 = arith.constant 0 : index
    %c0_4 = arith.constant 0 : index
    %2 = vector.load %arg2[%c0_3, %c0_4] : memref<1x32xf32, #tpu.memory_space<vmem>>, vector<1x32xf32>
    %cst = arith.constant dense<0.000000e+00> : vector<8x32xf32>
    %3 = tpu.matmul %0, %1, %cst {dimension_numbers = #tpu.dot_dimension_numbers<[1], [1], [0], [0], [0, 0, 1, 0], [], []>} : vector<8x32xf32>, vector<32x32xf32>, vector<8x32xf32> -> vector<8x32xf32>
    %4 = vector.broadcast %2 : vector<1x32xf32> to vector<8x32xf32>
    %5 = arith.addf %3, %4 : vector<8x32xf32>
    %cst_5 = arith.constant dense<0xFF800000> : vector<8xf32>
    %6 = vector.multi_reduction <maximumf>, %5, %cst_5 [1] : vector<8x32xf32> to vector<8xf32>
    %7 = vector.shape_cast %6 : vector<8xf32> to vector<8x1xf32>
    %8 = vector.broadcast %7 : vector<8x1xf32> to vector<8x32xf32>
    %9 = arith.subf %5, %8 : vector<8x32xf32>
    %10 = math.exp %9 : vector<8x32xf32>
    %cst_6 = arith.constant dense<0.000000e+00> : vector<8xf32>
    %11 = vector.multi_reduction <add>, %10, %cst_6 [1] : vector<8x32xf32> to vector<8xf32>
    %12 = vector.shape_cast %11 : vector<8xf32> to vector<8x1xf32>
    %13 = math.log %12 : vector<8x1xf32>
    %14 = arith.addf %7, %13 : vector<8x1xf32>
    %15 = vector.shape_cast %14 : vector<8x1xf32> to vector<1x8x1xf32>
    %cst_7 = arith.constant dense<0.000000e+00> : vector<1xf32>
    %16 = vector.multi_reduction <add>, %15, %cst_7 [1, 2] : vector<1x8x1xf32> to vector<1xf32>
    %17 = vector.shape_cast %16 : vector<1xf32> to vector<1x1x1xf32>
    %18 = vector.extract %17[0, 0, 0] : f32 from vector<1x1x1xf32>
    %19 = tpu.iota {dimensions = array<i32: 1>} : vector<1x32xi32>
    %cst_8 = arith.constant 0.000000e+00 : f32
    %20 = vector.broadcast %cst_8 : f32 to vector<1x32xf32>
    %c0_9 = arith.constant 0 : index
    %21 = memref.load %arg3[%c0_9] : memref<8xi32, #tpu.memory_space<smem>>
    %22 = vector.broadcast %21 : i32 to vector<1x32xi32>
    %23 = arith.cmpi eq, %19, %22 : vector<1x32xi32>
    %24 = vector.extract_strided_slice %5 {offsets = [0, 0], sizes = [1, 32], strides = [1, 1]} : vector<8x32xf32> to vector<1x32xf32>
    %cst_10 = arith.constant 0.000000e+00 : f32
    %25 = vector.broadcast %cst_10 : f32 to vector<1x32xf32>
    %26 = arith.select %23, %24, %25 : vector<1x32xi1>, vector<1x32xf32>
    %27 = arith.addf %20, %26 : vector<1x32xf32>
    %c1 = arith.constant 1 : index
    %28 = memref.load %arg3[%c1] : memref<8xi32, #tpu.memory_space<smem>>
    %29 = vector.broadcast %28 : i32 to vector<1x32xi32>
    %30 = arith.cmpi eq, %19, %29 : vector<1x32xi32>
    %31 = vector.extract_strided_slice %5 {offsets = [1, 0], sizes = [1, 32], strides = [1, 1]} : vector<8x32xf32> to vector<1x32xf32>
    %cst_11 = arith.constant 0.000000e+00 : f32
    %32 = vector.broadcast %cst_11 : f32 to vector<1x32xf32>
    %33 = arith.select %30, %31, %32 : vector<1x32xi1>, vector<1x32xf32>
    %34 = arith.addf %27, %33 : vector<1x32xf32>
    %c2 = arith.constant 2 : index
    %35 = memref.load %arg3[%c2] : memref<8xi32, #tpu.memory_space<smem>>
    %36 = vector.broadcast %35 : i32 to vector<1x32xi32>
    %37 = arith.cmpi eq, %19, %36 : vector<1x32xi32>
    %38 = vector.extract_strided_slice %5 {offsets = [2, 0], sizes = [1, 32], strides = [1, 1]} : vector<8x32xf32> to vector<1x32xf32>
    %cst_12 = arith.constant 0.000000e+00 : f32
    %39 = vector.broadcast %cst_12 : f32 to vector<1x32xf32>
    %40 = arith.select %37, %38, %39 : vector<1x32xi1>, vector<1x32xf32>
    %41 = arith.addf %34, %40 : vector<1x32xf32>
    %c3 = arith.constant 3 : index
    %42 = memref.load %arg3[%c3] : memref<8xi32, #tpu.memory_space<smem>>
    %43 = vector.broadcast %42 : i32 to vector<1x32xi32>
    %44 = arith.cmpi eq, %19, %43 : vector<1x32xi32>
    %45 = vector.extract_strided_slice %5 {offsets = [3, 0], sizes = [1, 32], strides = [1, 1]} : vector<8x32xf32> to vector<1x32xf32>
    %cst_13 = arith.constant 0.000000e+00 : f32
    %46 = vector.broadcast %cst_13 : f32 to vector<1x32xf32>
    %47 = arith.select %44, %45, %46 : vector<1x32xi1>, vector<1x32xf32>
    %48 = arith.addf %41, %47 : vector<1x32xf32>
    %c4 = arith.constant 4 : index
    %49 = memref.load %arg3[%c4] : memref<8xi32, #tpu.memory_space<smem>>
    %50 = vector.broadcast %49 : i32 to vector<1x32xi32>
    %51 = arith.cmpi eq, %19, %50 : vector<1x32xi32>
    %52 = vector.extract_strided_slice %5 {offsets = [4, 0], sizes = [1, 32], strides = [1, 1]} : vector<8x32xf32> to vector<1x32xf32>
    %cst_14 = arith.constant 0.000000e+00 : f32
    %53 = vector.broadcast %cst_14 : f32 to vector<1x32xf32>
    %54 = arith.select %51, %52, %53 : vector<1x32xi1>, vector<1x32xf32>
    %55 = arith.addf %48, %54 : vector<1x32xf32>
    %c5 = arith.constant 5 : index
    %56 = memref.load %arg3[%c5] : memref<8xi32, #tpu.memory_space<smem>>
    %57 = vector.broadcast %56 : i32 to vector<1x32xi32>
    %58 = arith.cmpi eq, %19, %57 : vector<1x32xi32>
    %59 = vector.extract_strided_slice %5 {offsets = [5, 0], sizes = [1, 32], strides = [1, 1]} : vector<8x32xf32> to vector<1x32xf32>
    %cst_15 = arith.constant 0.000000e+00 : f32
    %60 = vector.broadcast %cst_15 : f32 to vector<1x32xf32>
    %61 = arith.select %58, %59, %60 : vector<1x32xi1>, vector<1x32xf32>
    %62 = arith.addf %55, %61 : vector<1x32xf32>
    %c6 = arith.constant 6 : index
    %63 = memref.load %arg3[%c6] : memref<8xi32, #tpu.memory_space<smem>>
    %64 = vector.broadcast %63 : i32 to vector<1x32xi32>
    %65 = arith.cmpi eq, %19, %64 : vector<1x32xi32>
    %66 = vector.extract_strided_slice %5 {offsets = [6, 0], sizes = [1, 32], strides = [1, 1]} : vector<8x32xf32> to vector<1x32xf32>
    %cst_16 = arith.constant 0.000000e+00 : f32
    %67 = vector.broadcast %cst_16 : f32 to vector<1x32xf32>
    %68 = arith.select %65, %66, %67 : vector<1x32xi1>, vector<1x32xf32>
    %69 = arith.addf %62, %68 : vector<1x32xf32>
    %c7 = arith.constant 7 : index
    %70 = memref.load %arg3[%c7] : memref<8xi32, #tpu.memory_space<smem>>
    %71 = vector.broadcast %70 : i32 to vector<1x32xi32>
    %72 = arith.cmpi eq, %19, %71 : vector<1x32xi32>
    %73 = vector.extract_strided_slice %5 {offsets = [7, 0], sizes = [1, 32], strides = [1, 1]} : vector<8x32xf32> to vector<1x32xf32>
    %cst_17 = arith.constant 0.000000e+00 : f32
    %74 = vector.broadcast %cst_17 : f32 to vector<1x32xf32>
    %75 = arith.select %72, %73, %74 : vector<1x32xi1>, vector<1x32xf32>
    %76 = arith.addf %69, %75 : vector<1x32xf32>
    %77 = vector.shape_cast %76 : vector<1x32xf32> to vector<1x1x32xf32>
    %cst_18 = arith.constant dense<0.000000e+00> : vector<1xf32>
    %78 = vector.multi_reduction <add>, %77, %cst_18 [1, 2] : vector<1x1x32xf32> to vector<1xf32>
    %79 = vector.shape_cast %78 : vector<1xf32> to vector<1x1x1xf32>
    %80 = vector.extract %79[0, 0, 0] : f32 from vector<1x1x1xf32>
    %81 = arith.subf %18, %80 : f32
    %cst_19 = arith.constant 8.000000e+00 : f32
    %82 = arith.divf %81, %cst_19 : f32
    %c0_20 = arith.constant 0 : index
    %c0_21 = arith.constant 0 : index
    %83 = memref.load %arg4[%c0_20, %c0_21] : memref<1x1xf32, #tpu.memory_space<smem>>
    memref.store %82, %arg4[%c0_20, %c0_21] : memref<1x1xf32, #tpu.memory_space<smem>>
    return
  }
}

</mosaic_0001>

<bundles_post_ra>
// kernel: tpu_custom_call.1
= control target key start
LH: loop header
LB: loop body
LE: loop exit
PB: predicated region body
PF: predicated region fallthrough
CT: control target
= control target key end

     0   :  { %9 = vsyncpa [#allocation3], 0  ;;  %s502_s0 = inlined_call_operand.hbm [shape: f32[8,32], index: 0, kind: input, shape index: {}]   ;;  %s503_s1 = inlined_call_operand.hbm [shape: f32[32,32], index: 1, kind: input, shape index: {}]   ;;  %s504_s2 = inlined_call_operand.vmem [shape: f32[1,32], index: 2, kind: input, shape index: {}]   ;;  %s505_s3 = inlined_call_operand.vmem [shape: s32[8], index: 3, kind: input, shape index: {}]   ;;  %s506_s4 = inlined_call_operand.hbm [shape: f32[1,1], index: 4, kind: output, shape index: {}]  }
   0x1   :  { %10 = vsyncpa [#allocation7], 0 }
   0x2   :  { %11 = vsyncpa [#allocation5], 0 }
   0x3   :  { %12 = vsyncpa [#allocation4], 0  ;;  %s402_s15 = smov [#allocation2]   ;;  %s403_s17 = smov [#allocation6]  }
   0x4   :  { %s19_s16 = sshll.u32 %s402_s15, 4  ;;  %s28_s18 = sshll.u32 %s403_s17, 4  ;;  %s20_s16 = int_to_ptr.vmem [resolvable:$true] %s19_s16  ;;  %s436_s18 = int_to_ptr.vmem [resolvable:$true] %s28_s18 }
   0x5   :  { %s328_s21 = scalar_lea.hbm %s502_s0, 128 }
   0x6   :  { %p329_p0 = scmp.ne.s32.totalorder %s502_s0, %s328_s21  ;;  %p332_p1 = scmp.lt.u32.totalorder %s328_s21, %s502_s0 }
   0x8   :  { %p334_p2 = pnand %p332_p1, %p329_p0 }
   0xa   :  { %337 = shalt.err (!%p334_p2)
}
   0xb   :  { %s338_s26 = scalar_lea.vmem %s20_s16, 128  ;;  %p343_p4 = scmp.lt.s32.totalorder %s20_s16, %s20_s16 }
   0xc   :  { %p339_p3 = scmp.ne.s32.totalorder %s20_s16, %s338_s26  ;;  %p344_p5 = scmp.lt.s32.totalorder %s338_s26, %s338_s26 }
   0xe   :  { %p345_p6 = por %p344_p5, %p343_p4 }
  0x10   :  { %p346_p7 = pnand %p345_p6, %p339_p3 }
  0x12   :  { %349 = shalt.err (!%p346_p7)
}
  0x13   :  { %22 = dma.hbm_to_vmem [thread:$0]  %s502_s0, 128, %s20_s16, [#allocation3]  }
  0x14   :  { %s350_s5 = scalar_lea.hbm %s503_s1, 512 }
  0x15   :  { %p351_p8 = scmp.ne.s32.totalorder %s503_s1, %s350_s5  ;;  %p354_p9 = scmp.lt.u32.totalorder %s350_s5, %s503_s1 }
  0x17   :  { %p356_p10 = pnand %p354_p9, %p351_p8 }
  0x19   :  { %359 = shalt.err (!%p356_p10)
}
  0x1a   :  { %s360_s10 = scalar_lea.vmem %s436_s18, 512  ;;  %p365_p12 = scmp.lt.s32.totalorder %s436_s18, %s436_s18 }
  0x1b   :  { %p361_p11 = scmp.ne.s32.totalorder %s436_s18, %s360_s10  ;;  %p366_p13 = scmp.lt.s32.totalorder %s360_s10, %s360_s10 }
  0x1d   :  { %p367_p0 = por %p366_p13, %p365_p12 }
  0x1f   :  { %p368_p1 = pnand %p367_p0, %p361_p11 }
  0x21   :  { %371 = shalt.err (!%p368_p1)
}
  0x22   :  { %s404_s0 = smov 128   ;;  %s405_s11 = smov 8  }
  0x23   :  { %34 = dma.hbm_to_vmem [thread:$0]  %s503_s1, 512, %s436_s18, [#allocation7], %s404_s0, %s404_s0, %s405_s11  }
  0x24   :  { %s43_s16 = sshll.u32 %s505_s3, 4  ;;  %s44_s16 = int_to_ptr.vmem [resolvable:$true] %s43_s16 }
  0x25   :  { %s372_s17 = scalar_lea.vmem %s44_s16, 16  ;;  %p377_p3 = scmp.lt.s32.totalorder %s44_s16, %s44_s16 }
  0x26   :  { %p373_p2 = scmp.ne.s32.totalorder %s44_s16, %s372_s17  ;;  %p378_p4 = scmp.lt.s32.totalorder %s372_s17, %s372_s17 }
  0x28   :  { %p379_p5 = por %p378_p4, %p377_p3 }
  0x2a   :  { %p380_p6 = pnand %p379_p5, %p373_p2 }
  0x2c   :  { %383 = shalt.err (!%p380_p6)
}
  0x2d   :  { %s406_s19 = smov [#allocation8]  }
  0x2e   :  { %46 = dma.vmem_to_smem %s44_s16, 16, %s406_s19, [#allocation5]  }
  0x2f   :  { %394 = dma.done.wait [#allocation3], 128  }
  0x30   :  { %395 = vsyncadd [#allocation3], 4294967168 }
  0x31   :  { %396 = dma.done.wait [#allocation7], 512  }
  0x32   :  { %397 = vsyncadd [#allocation7], 4294966784 }
  0x33   :  { %398 = dma.done.wait [#allocation5], 16  }
  0x34   :  { %399 = vsyncadd [#allocation5], 4294967280 }
  0x35   :  { %56 = sfence }
  0x36   :  { %v58_v0 = vld [vmem:[#allocation6] sm:$0xff]  ;;  %v59_v1 = vld [vmem:[#allocation6 + $0x8] sm:$0xff]  ;;  %vm69_vm0 = vcmask 261120   ;;  %v407_v2 = vmov 0.0|0.0   ;;  %vm408_vm2 = vmmov 0   ;;  %v409_v4 = vmov 0.0  }
  0x37   :  { %303 = vmatprep.subr.bf16.mxu0 %v407_v2  ;;  %v304_v3 = vpack.c.bf16 %v59_v1, %v58_v0  ;;  %vm305_vm1 = vmpackc.low %vm69_vm0, %vm69_vm0  ;;  %300 = vmatprep.mubr.msk.f32.mxu0 %vm408_vm2, %v409_v4  ;;  %v60_v5 = vld [vmem:[#allocation6 + $0x10] sm:$0xff]  ;;  %v61_v6 = vld [vmem:[#allocation6 + $0x18] sm:$0xff]  ;;  %s280_s18 = sld [smem:[#allocation8 + $0x1]]  ;;  %v178_v19 = vlaneseq  ;;  %s281_s20 = sld [smem:[#allocation8 + $0x2]]  ;;  %vm167_vm11 = vcmask 7168   ;;  %vm241_vm12 = vcmask 253952  }
  0x38   :  { %v308_v7 = vpack.c.bf16 %v61_v6, %v60_v5  ;;  %v57_v8 = vld [vmem:[#allocation2] sm:$0xff]  ;;  %s282_s21 = sld [smem:[#allocation8 + $0x3]]  ;;  %s283_s22 = sld [smem:[#allocation8 + $0x4]] }
  0x39   :  { %306 = vmatpush3.bf16.xpose.msk.msra.mxu0 %vm305_vm1, %v304_v3  ;;  %v274_v9 = vld [vmem:[%s504_s2] ss:$0 sm:$0xff]  ;;  %s180_s2 = sld [smem:[#allocation8]]  ;;  %v179_v20 = vand.u32 127, %v178_v19  ;;  %s284_s23 = sld [smem:[#allocation8 + $0x5]] }
  0x3a   :  { %307 = vmatprep.subr.bf16.mxu0 %v407_v2  ;;  %s285_s24 = sld [smem:[#allocation8 + $0x6]]  ;;  %s286_s25 = sld [smem:[#allocation8 + $0x7]] }
  0x3b   :  { %s384_s6 = scalar_lea.hbm %s506_s4, 16 }
  0x3c   :  { %p385_p7 = scmp.ne.s32.totalorder %s506_s4, %s384_s6  ;;  %p388_p8 = scmp.lt.u32.totalorder %s384_s6, %s506_s4 }
  0x3d   :  { %v186_v21 = vstv %s280_s18  ;;  %v194_v24 = vstv %s281_s20 }
  0x3e   :  { %vm187_vm3 = vcmp.eq.s32.totalorder %v179_v20, %v186_v21  ;;  %vm195_vm5 = vcmp.eq.s32.totalorder %v179_v20, %v194_v24  ;;  %v202_v26 = vstv %s282_s21  ;;  %v210_v30 = vstv %s283_s22  ;;  %p390_p9 = pnand %p388_p8, %p385_p7 }
  0x3f   :  { %v181_v22 = vstv %s180_s2  ;;  %vm203_vm6 = vcmp.eq.s32.totalorder %v179_v20, %v202_v26  ;;  %vm211_vm7 = vcmp.eq.s32.totalorder %v179_v20, %v210_v30  ;;  %v218_v34 = vstv %s284_s23 }
  0x40   :  { %vm182_vm4 = vcmp.eq.s32.totalorder %v179_v20, %v181_v22  ;;  %vm219_vm8 = vcmp.eq.s32.totalorder %v179_v20, %v218_v34  ;;  %v226_v39 = vstv %s285_s24  ;;  %v234_v43 = vstv %s286_s25 }
  0x41   :  { %310 = vmatpush3.bf16.xpose.msk.msra.mxu0 %vm305_vm1, %v308_v7  ;;  %vm227_vm9 = vcmp.eq.s32.totalorder %v179_v20, %v226_v39  ;;  %vm235_vm10 = vcmp.eq.s32.totalorder %v179_v20, %v234_v43 }
  0x48   :  { %301 = vmatmul.mubr.msk.f32.vlgmr.msra.gmra.mrb[0].mxu0 %vm69_vm0, %v57_v8 }
 0x11b   :  { %v151_v10 = vpop.f32.mrb[0].mxu0 }
 0x11c   :  { %v476_v11 = vadd.f32 %v274_v9, %v151_v10  ;;  %v302_v12 = vpop.f32.mrb[1].mxu0 }
 0x11e   :  { %v155_v13 = vsel %vm69_vm0, %v476_v11, -inf  ;;  %v188_v23 = vsel %vm187_vm3, %v476_v11, 0.0  ;;  %v183_v27 = vsel %vm182_vm4, %v476_v11, 0.0  ;;  %v196_v28 = vsel %vm195_vm5, %v476_v11, 0.0 }
 0x11f   :  { %156 = vmax.xlane.f32.xlu0 %v155_v13  ;;  %v190_v25 = vrot.slane %v188_v23, 1  ;;  %v198_v31 = vrot.slane %v196_v28, 2  ;;  %v204_v32 = vsel %vm203_vm6, %v476_v11, 0.0  ;;  %v212_v36 = vsel %vm211_vm7, %v476_v11, 0.0 }
 0x120   :  { %v206_v35 = vrot.slane %v204_v32, 3  ;;  %v214_v40 = vrot.slane %v212_v36, 4  ;;  %v220_v41 = vsel %vm219_vm8, %v476_v11, 0.0  ;;  %v228_v45 = vsel %vm227_vm9, %v476_v11, 0.0 }
 0x121   :  { %v192_v29 = vadd.f32 %v190_v25, %v183_v27  ;;  %v222_v44 = vrot.slane %v220_v41, 5  ;;  %v230_v47 = vrot.slane %v228_v45, 6  ;;  %v236_v49 = vsel %vm235_vm10, %v476_v11, 0.0 }
 0x122   :  { %v238_v53 = vrot.slane %v236_v49, 7 }
 0x123   :  { %v200_v33 = vadd.f32 %v198_v31, %v192_v29 }
 0x125   :  { %v208_v38 = vadd.f32 %v206_v35, %v200_v33 }
 0x127   :  { %v216_v42 = vadd.f32 %v214_v40, %v208_v38 }
 0x129   :  { %v224_v46 = vadd.f32 %v222_v44, %v216_v42 }
 0x12b   :  { %v232_v51 = vadd.f32 %v230_v47, %v224_v46 }
 0x12d   :  { %v240_v55 = vadd.f32 %v238_v53, %v232_v51 }
 0x12f   :  { %v242_v56 = vsel %vm241_vm12, %v240_v55, 0.0 }
 0x1ac   :  { %v157_v14 = vpop.xlane.xlu0 %156 }
 0x1ad   :  { %v158_v15 = vsub.f32 %v476_v11, %v157_v14 }
 0x1af   :  { %v159_v16 = vmul.f32 1.442695, %v158_v15 }
 0x1b1   :  { %324 = vpow2.f32 %v159_v16 }
 0x1bb   :  { %v325_v17 = vpop.eup %324 }
 0x1bc   :  { %v161_v18 = vsel %vm69_vm0, %v325_v17, 0.0 }
 0x1bd   :  { %162 = vadd.xlane.f32.xlu0 %v161_v18 }
 0x24a   :  { %v163_v37 = vpop.xlane.xlu0 %162 }
 0x24b   :  { %326 = vlog2.f32 %v163_v37 }
 0x255   :  { %v327_v48 = vpop.eup %326 }
 0x256   :  { %v165_v50 = vmul.f32 0.6931472, %v327_v48 }
 0x258   :  { %v166_v52 = vadd.f32 %v165_v50, %v157_v14 }
 0x25a   :  { %v168_v54 = vsel %vm167_vm11, %v166_v52, 0.0 }
 0x25b   :  { %169 = vadd.xlane.f32.xlu1 %v168_v54 }
 0x25f   :  { %243 = vadd.xlane.f32.xlu1 %v242_v56 }
 0x2e8   :  { %v170_v57 = vpop.xlane.xlu1 %169 }
 0x2e9   :  { %v171_v58 = vrot.slane %v170_v57, 4 }
 0x2eb   :  { %v172_v59 = vadd.f32 %v171_v58, %v170_v57 }
 0x2ec   :  { %v244_v60 = vpop.xlane.xlu1 %243 }
 0x2ed   :  { %v173_v61 = vrot.slane %v172_v59, 2  ;;  %v245_v62 = vrot.slane %v244_v60, 4 }
 0x2ef   :  { %v246_v63 = vadd.f32 %v245_v62, %v244_v60  ;;  %v174_v0 = vadd.f32 %v173_v61, %v172_v59 }
 0x2f1   :  { %v247_v1 = vrot.slane %v246_v63, 2  ;;  %v175_v2 = vrot.slane %v174_v0, 1 }
 0x2f3   :  { %v248_v3 = vadd.f32 %v247_v1, %v246_v63  ;;  %v176_v4 = vadd.f32 %v175_v2, %v174_v0 }
 0x2f5   :  { %311 = vpush %v176_v4  ;;  %v249_v5 = vrot.slane %v248_v3, 1 }
 0x2f7   :  { %v250_v6 = vadd.f32 %v249_v5, %v248_v3 }
 0x2f9   :  { %313 = vpush %v250_v6 }
 0x326   :  { %s312_s26 = spop %311 }
 0x32a   :  { %s314_s27 = spop %313 }
 0x32b   :  { %s252_s28 = ssub.f32 %s312_s26, %s314_s27 }
 0x32d   :  { %s255_s29 = smul.f32 0.125, %s252_s28 }
 0x32f   :  { %257 = sst [smem:[#allocation9]] %s255_s29 }
 0x330   :  { %393 = shalt.err (!%p390_p9)
}
 0x331   :  { %s410_s0 = smov [#allocation9]  }
 0x332   :  { %265 = dma.smem_to_hbm %s410_s0, 16, %s506_s4, [#allocation4]  }
 0x333   :  { %400 = dma.done.wait [#allocation4], 16  }
 0x334   :  { %401 = vsyncadd [#allocation4], 4294967280 }
 0x335   :  { %269 = sfence }
 0x336   :  { %270 = vsyncpa [#allocation3], 1 }
 0x337   :  { %271 = vsyncpa [#allocation7], 1 }
 0x338   :  { %272 = vsyncpa [#allocation4], 1 }
 0x339   :  { %273 = vsyncpa [#allocation5], 1 }

</bundles_post_ra>
